<compile_context>
chip_gen: v6e
topology: v6e:2x2x1
jax: 0.10.0
libtpu: 0.0.40
codegen_flags: <defaults>
</compile_context>

<pallas_src>
import jax
import jax.numpy as jnp
from jax.experimental import pallas as pl
from jax.experimental.pallas import tpu as pltpu


# --------------------------------------------------------------------------- kernels
def _gap_kernel_attn(feat_ref, w_ref, out_ref, attn_ref):
    # feat_ref: (Bt, N, D) native dtype   w_ref: (1, D) f32
    # out_ref:  (Bt, D)                   attn_ref: (Bt, N) f32
    feat = feat_ref[...]                              # native dtype, no f32 copy
    w_row = w_ref[...].astype(jnp.float32)            # (1, D)

    # gate_nn: Linear(D -> 1) on the VPU (mul, promoted to f32) + XLU lane reduce.
    logits = jnp.sum(feat * w_row[None, :, :], axis=-1)              # (Bt, N) f32

    # softmax_nodes: exact, max-subtracted softmax over each graph's node axis.
    m = jnp.max(logits, axis=-1, keepdims=True)                       # (Bt, 1)
    e = jnp.exp(logits - m)                                           # (Bt, N)
    p = e * pl.reciprocal(jnp.sum(e, axis=-1, keepdims=True), approx=False)

    attn_ref[...] = p.astype(attn_ref.dtype)

    # sum_nodes(feat * gate): weighted sum over nodes -> (Bt, D), f32 accumulation.
    out_ref[...] = jnp.sum(feat * p[:, :, None], axis=1).astype(out_ref.dtype)


def _gap_kernel_noattn(feat_ref, w_ref, out_ref):
    # get_attention=False fast path: no (B, N) HBM write, normalize at the end.
    feat = feat_ref[...]
    w_row = w_ref[...].astype(jnp.float32)

    logits = jnp.sum(feat * w_row[None, :, :], axis=-1)               # (Bt, N) f32
    m = jnp.max(logits, axis=-1, keepdims=True)
    e = jnp.exp(logits - m)                                           # (Bt, N)

    num = jnp.sum(feat * e[:, :, None], axis=1)                       # (Bt, D) f32
    inv_z = pl.reciprocal(jnp.sum(e, axis=-1, keepdims=True), approx=False)  # (Bt, 1)
    out_ref[...] = (num * inv_z).astype(out_ref.dtype)


# --------------------------------------------------------------------------- wrapper
def _vmem_capacity_bytes():
    try:
        return int(pltpu.get_tpu_info().vmem_capacity_bytes)
    except Exception:
        return 64 * 1024 * 1024  # conservative (v7x per-TC VMEM)


def _pick_block_b(B, N, D, itemsize, vmem_bytes):
    """Graphs per grid step, sized against the chip's VMEM.

    Per-graph working set per step:
      2 x native feat tile (double-buffered input DMA)
      + ~3 x f32 tile (promoted temporaries feat*w / feat*p)
      + small per-graph outputs.
    """
    per_graph = N * D * (2 * itemsize + 3 * 4) + (N + D) * 4 * 2
    budget = int(vmem_bytes * 0.4)          # headroom for compiler scratch / pipeline
    bt = max(1, budget // max(per_graph, 1))
    if bt >= B:
        return B                            # single grid step, block == full array
    return max(8, (bt // 8) * 8)            # multiple of 8 (sublane rule for outputs)


def global_attention_pooling(feat, w_gate, b_gate=None, get_attention=False,
                             block_b=None):
    """feat: (B, N, D); w_gate: (D, 1) or (D,); b_gate: scalar (unused, see note).

    The gate bias is accepted for API parity with nn.Linear(D, 1) but is not passed to
    the kernel: softmax over a graph's nodes is shift-invariant, so a per-graph-constant
    bias changes neither the attention weights nor the readout.
    """
    del b_gate
    B, N, D = feat.shape
    itemsize = jnp.dtype(feat.dtype).itemsize
    vmem_bytes = _vmem_capacity_bytes()

    bt = block_b if block_b is not None else _pick_block_b(B, N, D, itemsize, vmem_bytes)
    bt = max(1, min(bt, B)) if bt >= B else bt
    b_pad = -(-B // bt) * bt
    if b_pad != B:
        feat = jnp.pad(feat, ((0, b_pad - B), (0, 0), (0, 0)))

    w_row = jnp.reshape(w_gate, (1, D)).astype(jnp.float32)   # lane-dense weight row

    vmem_limit = min(int(vmem_bytes * 3 // 4), 128 * 1024 * 1024)
    compiler_params = pltpu.CompilerParams(
        dimension_semantics=("parallel",),
        vmem_limit_bytes=vmem_limit,
    )
    in_specs = [
        pl.BlockSpec((bt, N, D), lambda i: (i, 0, 0)),        # Bt graphs per step
        pl.BlockSpec((1, D), lambda i: (0, 0)),               # shared gate weight
    ]
    grid = (b_pad // bt,)

    if get_attention:
        readout, attn = pl.pallas_call(
            _gap_kernel_attn,
            out_shape=(
                jax.ShapeDtypeStruct((b_pad, D), feat.dtype),
                jax.ShapeDtypeStruct((b_pad, N), jnp.float32),
            ),
            grid_spec=pltpu.PrefetchScalarGridSpec(
                num_scalar_prefetch=0,
                grid=grid,
                in_specs=in_specs,
                out_specs=[
                    pl.BlockSpec((bt, D), lambda i: (i, 0)),
                    pl.BlockSpec((bt, N), lambda i: (i, 0)),
                ],
            ),
            compiler_params=compiler_params,
        )(feat, w_row)
        readout = readout[:B]
        attn = attn[:B].reshape(B, N, 1)     # DGL-shaped attention (last dim 1)
        return readout, attn

    readout = pl.pallas_call(
        _gap_kernel_noattn,
        out_shape=jax.ShapeDtypeStruct((b_pad, D), feat.dtype),
        grid_spec=pltpu.PrefetchScalarGridSpec(
            num_scalar_prefetch=0,
            grid=grid,
            in_specs=in_specs,
            out_specs=pl.BlockSpec((bt, D), lambda i: (i, 0)),
        ),
        compiler_params=compiler_params,
    )(feat, w_row)
    return readout[:B]


# ------------------------------------------------------------------------- reference
def _reference(feat, w_gate, b_gate):
    logits = jnp.einsum("bnd,do->bno", feat.astype(jnp.float32),
                        w_gate.reshape(-1, 1).astype(jnp.float32)) + b_gate  # (B,N,1)
    p = jax.nn.softmax(logits, axis=1)
    return jnp.sum(feat.astype(jnp.float32) * p, axis=1)


if __name__ == "__main__":
    key = jax.random.PRNGKey(0)
    k_feat, k_w, k_b = jax.random.split(key, 3)

    B, N, D = 2, 16, 32           # 2 graphs, 16 nodes each, 32-dim features
    feat = jax.random.normal(k_feat, (B, N, D), dtype=jnp.float32)

    # Deterministic gate_nn = Linear(D, 1) parameters (synthetic init).
    bound = 1.0 / (D ** 0.5)
    w_gate = jax.random.uniform(k_w, (D, 1), minval=-bound, maxval=bound,
                                dtype=jnp.float32)
    b_gate = jax.random.uniform(k_b, (), minval=-bound, maxval=bound,
                                dtype=jnp.float32)
    # TODO(synk): feat_nn is None in this configuration (module default); a provided
    # feat_nn would be an extra linear applied to `feat` before the weighted sum.

    # --- get_attention=True path -------------------------------------------------
    readout, attn = global_attention_pooling(feat, w_gate, b_gate, get_attention=True)
    readout = jax.block_until_ready(readout)
    attn = jax.block_until_ready(attn)

    ref = _reference(feat, w_gate, b_gate)
    assert readout.shape == (B, D)
    assert attn.shape == (B, N, 1)
    assert jnp.allclose(readout, ref, atol=1e-4, rtol=1e-4)
    assert jnp.allclose(jnp.sum(attn, axis=1), jnp.ones((B, 1)), atol=1e-5)

    # --- get_attention=False fast path -------------------------------------------
    readout_only = jax.block_until_ready(
        global_attention_pooling(feat, w_gate, b_gate, get_attention=False))
    assert readout_only.shape == (B, D)
    assert jnp.allclose(readout_only, ref, atol=1e-4, rtol=1e-4)

    # --- bf16 inputs (no in-kernel f32 feat copy; looser tolerance for bf16 output)
    feat_bf16 = feat.astype(jnp.bfloat16)
    ro_bf16 = jax.block_until_ready(
        global_attention_pooling(feat_bf16, w_gate, b_gate, get_attention=False))
    ref_bf16 = _reference(feat_bf16, w_gate, b_gate)
    assert jnp.allclose(ro_bf16.astype(jnp.float32), ref_bf16, atol=5e-2, rtol=5e-2)

    print("KERNEL_OK")
</pallas_src>

<mosaic_0001>
module attributes {stable_mosaic.version = 11 : i64} {
  func.func @_gap_kernel_attn(%arg0: i32, %arg1: memref<2x16x32xf32, #tpu.memory_space<vmem>>, %arg2: memref<1x32xf32, #tpu.memory_space<vmem>>, %arg3: memref<2x32xf32, #tpu.memory_space<vmem>>, %arg4: memref<2x16xf32, #tpu.memory_space<vmem>>) attributes {dimension_semantics = [#tpu.dimension_semantics<parallel>], iteration_bounds = array<i64: 1>, scalar_prefetch = 0 : i64, scratch_operands = 0 : i64, tpu.core_type = #tpu.core_type<tc>, window_params = [{transform_indices = @transform_0, window_bounds = array<i64: 2, 16, 32>}, {pipeline_mode = #tpu.pipeline_mode<synchronous>, transform_indices = @transform_1, window_bounds = array<i64: 1, 32>}, {transform_indices = @transform_2, window_bounds = array<i64: 2, 32>}, {transform_indices = @transform_3, window_bounds = array<i64: 2, 16>}]} {
    %c0 = arith.constant 0 : index
    %c0_0 = arith.constant 0 : index
    %c0_1 = arith.constant 0 : index
    %0 = vector.load %arg1[%c0, %c0_0, %c0_1] : memref<2x16x32xf32, #tpu.memory_space<vmem>>, vector<2x16x32xf32>
    %c0_2 = arith.constant 0 : index
    %c0_3 = arith.constant 0 : index
    %1 = vector.load %arg2[%c0_2, %c0_3] : memref<1x32xf32, #tpu.memory_space<vmem>>, vector<1x32xf32>
    %2 = vector.shape_cast %1 : vector<1x32xf32> to vector<1x1x32xf32>
    %3 = vector.broadcast %2 : vector<1x1x32xf32> to vector<2x16x32xf32>
    %4 = arith.mulf %0, %3 : vector<2x16x32xf32>
    %cst = arith.constant dense<0.000000e+00> : vector<2x16xf32>
    %5 = vector.multi_reduction <add>, %4, %cst [2] : vector<2x16x32xf32> to vector<2x16xf32>
    %cst_4 = arith.constant dense<0xFF800000> : vector<2xf32>
    %6 = vector.multi_reduction <maximumf>, %5, %cst_4 [1] : vector<2x16xf32> to vector<2xf32>
    %7 = vector.shape_cast %6 : vector<2xf32> to vector<2x1xf32>
    %8 = vector.broadcast %7 : vector<2x1xf32> to vector<2x16xf32>
    %9 = arith.subf %5, %8 : vector<2x16xf32>
    %10 = math.exp %9 : vector<2x16xf32>
    %cst_5 = arith.constant dense<0.000000e+00> : vector<2xf32>
    %11 = vector.multi_reduction <add>, %10, %cst_5 [1] : vector<2x16xf32> to vector<2xf32>
    %12 = vector.shape_cast %11 : vector<2xf32> to vector<2x1xf32>
    %13 = tpu.reciprocal %12 : vector<2x1xf32> -> vector<2x1xf32>
    %14 = vector.broadcast %13 : vector<2x1xf32> to vector<2x16xf32>
    %15 = arith.mulf %10, %14 : vector<2x16xf32>
    %c0_6 = arith.constant 0 : index
    %c0_7 = arith.constant 0 : index
    %16 = vector.load %arg4[%c0_6, %c0_7] : memref<2x16xf32, #tpu.memory_space<vmem>>, vector<2x16xf32>
    tpu.vector_store %arg4[%c0_6, %c0_7], %15 {strides = array<i32>} : memref<2x16xf32, #tpu.memory_space<vmem>>, vector<2x16xf32>,
    %17 = vector.shape_cast %15 : vector<2x16xf32> to vector<2x16x1xf32>
    %18 = vector.broadcast %17 : vector<2x16x1xf32> to vector<2x16x32xf32>
    %19 = arith.mulf %0, %18 : vector<2x16x32xf32>
    %cst_8 = arith.constant dense<0.000000e+00> : vector<2x32xf32>
    %20 = vector.multi_reduction <add>, %19, %cst_8 [1] : vector<2x16x32xf32> to vector<2x32xf32>
    %c0_9 = arith.constant 0 : index
    %c0_10 = arith.constant 0 : index
    %21 = vector.load %arg3[%c0_9, %c0_10] : memref<2x32xf32, #tpu.memory_space<vmem>>, vector<2x32xf32>
    tpu.vector_store %arg3[%c0_9, %c0_10], %20 {strides = array<i32>} : memref<2x32xf32, #tpu.memory_space<vmem>>, vector<2x32xf32>,
    return
  }
  func.func @transform_0(%arg0: i32) -> (i32, i32, i32) {
    %c0_i32 = arith.constant 0 : i32
    %c0_i32_0 = arith.constant 0 : i32
    %c0_i32_1 = arith.constant 0 : i32
    return %arg0, %c0_i32, %c0_i32_0 : i32, i32, i32
  }
  func.func @transform_1(%arg0: i32) -> (i32, i32) {
    %c0_i32 = arith.constant 0 : i32
    %c0_i32_0 = arith.constant 0 : i32
    %c0_i32_1 = arith.constant 0 : i32
    return %c0_i32, %c0_i32_0 : i32, i32
  }
  func.func @transform_2(%arg0: i32) -> (i32, i32) {
    %c0_i32 = arith.constant 0 : i32
    %c0_i32_0 = arith.constant 0 : i32
    return %arg0, %c0_i32 : i32, i32
  }
  func.func @transform_3(%arg0: i32) -> (i32, i32) {
    %c0_i32 = arith.constant 0 : i32
    %c0_i32_0 = arith.constant 0 : i32
    return %arg0, %c0_i32 : i32, i32
  }
}

</mosaic_0001>

<bundles_post_ra>
// kernel: tpu_custom_call.1
= control target key start
LH: loop header
LB: loop body
LE: loop exit
PB: predicated region body
PF: predicated region fallthrough
CT: control target
= control target key end

     0   :  { %9 = vsyncpa [#allocation3], 0  ;;  %s448_s0 = inlined_call_operand.hbm [shape: f32[2,16,32], index: 0, kind: input, shape index: {}]   ;;  %s449_s1 = inlined_call_operand.vmem [shape: f32[1,32], index: 1, kind: input, shape index: {}]   ;;  %s450_s2 = inlined_call_operand.hbm [shape: f32[2,32], index: 2, kind: output, shape index: {0}]   ;;  %s451_s3 = inlined_call_operand.hbm [shape: f32[2,16], index: 3, kind: output, shape index: {1}]  }
   0x1   :  { %10 = vsyncpa [#allocation4], 0 }
   0x2   :  { %11 = vsyncpa [#allocation7], 0  ;;  %s351_s12 = smov [#allocation2]  }
   0x3   :  { %s17_s13 = sshll.u32 %s351_s12, 4  ;;  %s18_s13 = int_to_ptr.vmem [resolvable:$true] %s17_s13 }
   0x4   :  { %s293_s14 = scalar_lea.vmem %s18_s13, 512  ;;  %p298_p1 = scmp.lt.s32.totalorder %s18_s13, %s18_s13 }
   0x5   :  { %p294_p0 = scmp.ne.s32.totalorder %s18_s13, %s293_s14  ;;  %p299_p2 = scmp.lt.s32.totalorder %s293_s14, %s293_s14 }
   0x7   :  { %p300_p3 = por %p299_p2, %p298_p1 }
   0x9   :  { %p301_p4 = pnand %p300_p3, %p294_p0 }
   0xb   :  { %304 = shalt.err (!%p301_p4)
}
   0xc   :  { %s352_s15 = smov 128   ;;  %s353_s16 = smov 8  }
   0xd   :  { %23 = dma.hbm_to_vmem [thread:$0]  %s448_s0, 512, %s18_s13, [#allocation3], %s352_s15, %s352_s15, %s353_s16  }
   0xe   :  { %345 = dma.done.wait [#allocation3], 512  }
   0xf   :  { %346 = vsyncadd [#allocation3], 4294966784  ;;  %v380_v0 = vld [vmem:[#allocation2 + $0x10] sm:$0xff]  ;;  %v266_v1 = vld [vmem:[%s449_s1] ss:$0 sm:$0xff]  ;;  %vm44_vm0 = vcmask 261120   ;;  %v61_v13 = vlaneseq }
  0x10   :  { %v385_v2 = vld [vmem:[#allocation2] sm:$0xff]  ;;  %v42_v3 = vmul.f32 %v266_v1, %v380_v0  ;;  %v389_v5 = vld [vmem:[#allocation2 + $0x18] sm:$0xff]  ;;  %v391_v6 = vld [vmem:[#allocation2 + $0x8] sm:$0xff]  ;;  %vm72_vm1 = vcmask 130112   ;;  %vm83_vm2 = vcmask 1041409   ;;  %vm86_vm3 = vcmask 123904  }
  0x11   :  { %v40_v4 = vmul.f32 %v266_v1, %v385_v2  ;;  %v43_v7 = vmul.f32 %v266_v1, %v389_v5  ;;  %v41_v8 = vmul.f32 %v266_v1, %v391_v6  ;;  %v62_v14 = vand.u32 127, %v61_v13  ;;  %s355_s0 = smov [#allocation6]  }
  0x12   :  { %v51_v9 = vsel %vm44_vm0, %v42_v3, 0.0  ;;  %v399_v15 = vshrl.u32 %v61_v13, 7  ;;  %v354_v31 = vmov 0   ;;  %s253_s1 = sshll.u32 %s355_s0, 4  ;;  %s254_s1 = int_to_ptr.vmem [resolvable:$true] %s253_s1 }
  0x13   :  { %v45_v10 = vsel %vm44_vm0, %v40_v4, 0.0  ;;  %52 = vadd.xlane.f32.xlu1 %v51_v9  ;;  %v54_v11 = vsel %vm44_vm0, %v43_v7, 0.0  ;;  %v48_v12 = vsel %vm44_vm0, %v41_v8, 0.0  ;;  %v67_v16 = vadd.s32 4294967288, %v62_v14  ;;  %274 = vset.pattern.permute.xlu0 %v354_v31  ;;  %s305_s21 = scalar_lea.vmem %s254_s1, 32  ;;  %p310_p6 = scmp.lt.s32.totalorder %s254_s1, %s254_s1 }
  0x14   :  { %46 = vadd.xlane.f32.xlu0 %v45_v10  ;;  %v402_v19 = vsub.s32 %v62_v14, %v399_v15  ;;  %273 = vset.pattern.permute.xlu1 %v354_v31  ;;  %v93_v32 = vsub.s32 0, %v399_v15  ;;  %v97_v33 = vsub.s32 1, %v399_v15  ;;  %p306_p5 = scmp.ne.s32.totalorder %s254_s1, %s305_s21  ;;  %p311_p7 = scmp.lt.s32.totalorder %s305_s21, %s305_s21 }
  0x15   :  { %v405_v20 = vsub.s32 %v67_v16, %v399_v15 }
  0x16   :  { %p312_p8 = por %p311_p7, %p310_p6 }
  0x17   :  { %55 = vadd.xlane.f32.xlu1 %v54_v11 }
  0x18   :  { %49 = vadd.xlane.f32.xlu0 %v48_v12  ;;  %p313_p9 = pnand %p312_p8, %p306_p5 }
  0x9c   :  { %v53_v17 = vpop.xlane.xlu1 %52 }
  0x9d   :  { %v47_v18 = vpop.xlane.xlu0 %46  ;;  %v77_v23 = vrot.slane %v53_v17, %v402_v19 }
  0x9e   :  { %v66_v24 = vrot.slane %v47_v18, %v402_v19 }
  0xa0   :  { %v56_v21 = vpop.xlane.xlu1 %55 }
  0xa1   :  { %v50_v22 = vpop.xlane.xlu0 %49  ;;  %v81_v25 = vrot.slane %v56_v21, %v405_v20 }
  0xa2   :  { %v71_v26 = vrot.slane %v50_v22, %v405_v20 }
  0xa3   :  { %v82_v28 = vsel %vm72_vm1, %v81_v25, %v77_v23 }
  0xa4   :  { %v73_v27 = vsel %vm72_vm1, %v71_v26, %v66_v24 }
  0xa5   :  { %v84_v29 = vsel %vm83_vm2, %v82_v28, %v73_v27 }
  0xa6   :  { %v87_v30 = vsel %vm86_vm3, %v84_v29, -inf }
  0xa7   :  { %88 = vmax.xlane.f32.xlu0 %v87_v30 }
 0x130   :  { %v89_v34 = vpop.xlane.xlu0 %88 }
 0x131   :  { %v94_v35 = vrot.slane %v89_v34, %v93_v32  ;;  %v98_v36 = vrot.slane %v89_v34, %v97_v33 }
 0x133   :  { %v101_v37 = vsub.f32 %v47_v18, %v94_v35  ;;  %v102_v38 = vsub.f32 %v50_v22, %v94_v35  ;;  %v103_v39 = vsub.f32 %v53_v17, %v98_v36  ;;  %v104_v42 = vsub.f32 %v56_v21, %v98_v36 }
 0x135   :  { %v105_v40 = vmul.f32 1.442695, %v101_v37  ;;  %v107_v41 = vmul.f32 1.442695, %v102_v38  ;;  %v109_v43 = vmul.f32 1.442695, %v103_v39 }
 0x136   :  { %v111_v44 = vmul.f32 1.442695, %v104_v42 }
 0x137   :  { %275 = vpow2.f32 %v105_v40 }
 0x138   :  { %277 = vpow2.f32 %v107_v41 }
 0x139   :  { %279 = vpow2.f32 %v109_v43 }
 0x13a   :  { %281 = vpow2.f32 %v111_v44 }
 0x144   :  { %v276_v45 = vpop.eup %275 }
 0x145   :  { %v278_v46 = vpop.eup %277  ;;  %118 = vperm.xlu1 %273, %v276_v45  }
 0x146   :  { %121 = vperm.xlu0 %274, %v278_v46   ;;  %v280_v47 = vpop.eup %279 }
 0x147   :  { %v282_v48 = vpop.eup %281 }
 0x149   :  { %124 = vperm.xlu1 %273, %v280_v47  }
 0x14d   :  { %127 = vperm.xlu1 %273, %v282_v48  }
 0x1c0   :  { %v119_v49 = vpop.permute.xlu1 %118 }
 0x1c1   :  { %v122_v50 = vpop.permute.xlu0 %121  ;;  %v132_v53 = vrot.slane %v119_v49, %v402_v19 }
 0x1c2   :  { %v136_v52 = vrot.slane %v122_v50, %v405_v20 }
 0x1c4   :  { %v125_v51 = vpop.permute.xlu1 %124  ;;  %v137_v57 = vsel %vm72_vm1, %v136_v52, %v132_v53 }
 0x1c5   :  { %v141_v55 = vrot.slane %v125_v51, %v402_v19 }
 0x1c8   :  { %v128_v54 = vpop.permute.xlu1 %127 }
 0x1c9   :  { %v145_v56 = vrot.slane %v128_v54, %v405_v20 }
 0x1cb   :  { %v146_v58 = vsel %vm72_vm1, %v145_v56, %v141_v55 }
 0x1cc   :  { %v147_v59 = vsel %vm83_vm2, %v146_v58, %v137_v57 }
 0x1cd   :  { %v149_v60 = vsel %vm86_vm3, %v147_v59, 0.0 }
 0x1ce   :  { %150 = vadd.xlane.f32.xlu1 %v149_v60 }
 0x257   :  { %v151_v61 = vpop.xlane.xlu1 %150 }
 0x258   :  { %283 = vrcp.f32 %v151_v61 }
 0x265   :  { %v284_v62 = vpop.eup %283 }
 0x266   :  { %v157_v63 = vrot.slane %v284_v62, %v93_v32  ;;  %v161_v4 = vrot.slane %v284_v62, %v97_v33 }
 0x268   :  { %v164_v1 = vmul.f32 %v276_v45, %v157_v63  ;;  %v165_v3 = vmul.f32 %v278_v46, %v157_v63  ;;  %v166_v7 = vmul.f32 %v280_v47, %v161_v4  ;;  %v167_v8 = vmul.f32 %v282_v48, %v161_v4 }
 0x26a   :  { %173 = vperm.xlu0 %274, %v164_v1  }
 0x26e   :  { %176 = vperm.xlu0 %274, %v165_v3  }
 0x272   :  { %179 = vperm.xlu0 %274, %v166_v7  }
 0x276   :  { %182 = vperm.xlu0 %274, %v167_v8  }
 0x2e5   :  { %v174_v9 = vpop.permute.xlu0 %173 }
 0x2e6   :  { %v209_v10 = vmul.f32 %v174_v9, %v385_v2  ;;  %v187_v2 = vrot.slane %v174_v9, %v402_v19 }
 0x2e8   :  { %v213_v13 = vsel %vm44_vm0, %v209_v10, 0.0 }
 0x2e9   :  { %v177_v11 = vpop.permute.xlu0 %176 }
 0x2ea   :  { %v210_v12 = vmul.f32 %v177_v11, %v391_v6  ;;  %v191_v18 = vrot.slane %v177_v11, %v405_v20 }
 0x2ec   :  { %v214_v14 = vsel %vm44_vm0, %v210_v12, 0.0 }
 0x2ed   :  { %v215_v15 = vadd.f32 %v214_v14, %v213_v13  ;;  %v180_v16 = vpop.permute.xlu0 %179 }
 0x2ee   :  { %v211_v21 = vmul.f32 %v180_v16, %v380_v0  ;;  %v196_v24 = vrot.slane %v180_v16, %v402_v19  ;;  %v192_v0 = vsel %vm72_vm1, %v191_v18, %v187_v2 }
 0x2ef   :  { %v216_v17 = vrot.slane %v215_v15, 4 }
 0x2f0   :  { %v222_v26 = vsel %vm44_vm0, %v211_v21, 0.0 }
 0x2f1   :  { %v217_v22 = vadd.f32 %v216_v17, %v215_v15  ;;  %v183_v23 = vpop.permute.xlu0 %182 }
 0x2f2   :  { %v200_v6 = vrot.slane %v183_v23, %v405_v20  ;;  %v212_v25 = vmul.f32 %v183_v23, %v389_v5 }
 0x2f3   :  { %v218_v29 = vrot.slane %v217_v22, 2 }
 0x2f4   :  { %v201_v27 = vsel %vm72_vm1, %v200_v6, %v196_v24  ;;  %v223_v28 = vsel %vm44_vm0, %v212_v25, 0.0 }
 0x2f5   :  { %v224_v30 = vadd.f32 %v223_v28, %v222_v26  ;;  %v202_v31 = vsel %vm83_vm2, %v201_v27, %v192_v0 }
 0x2f6   :  { %204 = vst.msk [vmem:[#allocation6] sm:$0x3] %vm86_vm3, %v202_v31 }
 0x2f7   :  { %v225_v19 = vrot.slane %v224_v30, 4 }
 0x2f8   :  { %316 = shalt.err (!%p313_p9)
}
 0x2f9   :  { %256 = dma.vmem_to_hbm [thread:$0]  %s254_s1, 32, %s451_s3, [#allocation7]   ;;  %v219_v5 = vadd.f32 %v218_v29, %v217_v22  ;;  %v226_v20 = vadd.f32 %v225_v19, %v224_v30  ;;  %vm235_vm4 = vcmask 254976  }
 0x2fa   :  { %s356_s24 = smov [#allocation5]  }
 0x2fb   :  { %v227_v32 = vrot.slane %v226_v20, 2  ;;  %v220_v34 = vrot.slane %v219_v5, 1  ;;  %s243_s25 = sshll.u32 %s356_s24, 4  ;;  %s244_s25 = int_to_ptr.vmem [resolvable:$true] %s243_s25 }
 0x2fc   :  { %s325_s26 = scalar_lea.vmem %s244_s25, 32  ;;  %p330_p11 = scmp.lt.s32.totalorder %s244_s25, %s244_s25 }
 0x2fd   :  { %v228_v33 = vadd.f32 %v227_v32, %v226_v20  ;;  %v221_v36 = vadd.f32 %v220_v34, %v219_v5  ;;  %p326_p10 = scmp.ne.s32.totalorder %s244_s25, %s325_s26  ;;  %p331_p12 = scmp.lt.s32.totalorder %s325_s26, %s325_s26 }
 0x2ff   :  { %v229_v35 = vrot.slane %v228_v33, 1  ;;  %p332_p13 = por %p331_p12, %p330_p11 }
 0x301   :  { %v230_v37 = vadd.f32 %v229_v35, %v228_v33  ;;  %p333_p0 = pnand %p332_p13, %p326_p10 }
 0x303   :  { %v233_v38 = vsel %vm83_vm2, %v230_v37, %v221_v36 }
 0x304   :  { %236 = vst.msk [vmem:[#allocation5] sm:$0x3] %vm235_vm4, %v233_v38 }
 0x305   :  { %336 = shalt.err (!%p333_p0)
}
 0x306   :  { %246 = dma.vmem_to_hbm [thread:$0]  %s244_s25, 32, %s450_s2, [#allocation4]  }
 0x307   :  { %347 = dma.done.wait [#allocation4], 32  }
 0x308   :  { %348 = vsyncadd [#allocation4], 4294967264 }
 0x309   :  { %349 = dma.done.wait [#allocation7], 32  }
 0x30a   :  { %350 = vsyncadd [#allocation7], 4294967264 }
 0x30b   :  { %263 = vsyncpa [#allocation3], 1 }
 0x30c   :  { %264 = vsyncpa [#allocation4], 1 }
 0x30d   :  { %265 = vsyncpa [#allocation7], 1 }

</bundles_post_ra>
